<compile_context>
chip_gen: v7x
topology: tpu7x:2x2x1
jax: 0.10.0
libtpu: 0.0.40
codegen_flags: <defaults>
</compile_context>

<pallas_src>
import functools

import jax
import jax.numpy as jnp
from jax.experimental import pallas as pl
from jax.experimental.pallas import tpu as pltpu

HIDDEN_DIMS = 128


def _round_up(x, m):
    return ((x + m - 1) // m) * m


def _actor_kernel(x_ref, w1_ref, b1_ref, w2_ref, b2_ref, w3_ref, b3_ref, out_ref,
                  *, scale, shift):
    # Input tile arrives f32; cast to bf16 on the VPU right before the MXU.
    x = x_ref[...].astype(jnp.bfloat16)
    # layer 1: (TB, D) @ (D, H) -> f32 acc; bias + ReLU in f32; repack bf16.
    h1 = jnp.dot(x, w1_ref[...], preferred_element_type=jnp.float32)
    h1 = jnp.maximum(h1 + b1_ref[...], 0.0).astype(jnp.bfloat16)
    # layer 2: (TB, H) @ (H, H)
    h2 = jnp.dot(h1, w2_ref[...], preferred_element_type=jnp.float32)
    h2 = jnp.maximum(h2 + b2_ref[...], 0.0).astype(jnp.bfloat16)
    # layer 3: (TB, H) @ (H, A); tanh on the EUP; folded affine in the epilogue.
    a = jnp.tanh(
        jnp.dot(h2, w3_ref[...], preferred_element_type=jnp.float32) + b3_ref[...]
    )
    out_ref[...] = a * scale + shift


def local_actor_forward(states, params, *, max_action=1.0,
                        tb_cap=2048, single_tile_max=1024):
    """states: (B, state_dim) f32. Returns (B, action_dim) f32.

    Semantics: (tanh(MLP(states)) * max_action + 1) / 2   (PyTorch local_Actor).
    Note: the result lies in [0, 1] only when max_action <= 1.
    """
    w1, b1, w2, b2, w3, b3 = params
    state_dim = w1.shape[0]
    action_dim = w3.shape[1]
    B = states.shape[0]

    # Weights are tiny and grid-resident; cast them once (negligible), while
    # the batch-sized input is cast in-kernel to avoid an extra HBM pass.
    w1b = w1.astype(jnp.bfloat16)
    w2b = w2.astype(jnp.bfloat16)
    w3b = w3.astype(jnp.bfloat16)

    if B <= single_tile_max:
        # Single grid step; block shape equals the full array, so any B is a
        # legal block and there is zero pipeline / per-step overhead.
        tb = B
        grid = (1,)
    else:
        # Large batch: big tiles (sweepable via tb_cap), but keep >=2 steps so
        # the "parallel" batch axis can split across v7x's 2 TensorCores.
        # Partial tail blocks are handled by Pallas write-masking (rows are
        # independent), so no padding and no wasted full-tile tail work.
        tb = min(tb_cap, _round_up(pl.cdiv(B, 2), 8))
        grid = (pl.cdiv(B, tb),)

    kernel = functools.partial(
        _actor_kernel,
        scale=0.5 * float(max_action),   # (a*m + 1)/2 == a*(m/2) + 1/2
        shift=0.5,
    )

    out = pl.pallas_call(
        kernel,
        out_shape=jax.ShapeDtypeStruct((B, action_dim), jnp.float32),
        grid=grid,
        in_specs=[
            pl.BlockSpec((tb, state_dim), lambda i: (i, 0)),             # x tile (f32)
            pl.BlockSpec((state_dim, HIDDEN_DIMS), lambda i: (0, 0)),    # w1 (resident)
            pl.BlockSpec((1, HIDDEN_DIMS), lambda i: (0, 0)),            # b1
            pl.BlockSpec((HIDDEN_DIMS, HIDDEN_DIMS), lambda i: (0, 0)),  # w2
            pl.BlockSpec((1, HIDDEN_DIMS), lambda i: (0, 0)),            # b2
            pl.BlockSpec((HIDDEN_DIMS, action_dim), lambda i: (0, 0)),   # w3
            pl.BlockSpec((1, action_dim), lambda i: (0, 0)),             # b3
        ],
        out_specs=pl.BlockSpec((tb, action_dim), lambda i: (i, 0)),
        compiler_params=pltpu.CompilerParams(
            dimension_semantics=("parallel",)),  # megacore sharding on v7x
    )(states.astype(jnp.float32), w1b, b1, w2b, b2, w3b, b3)

    return out


def init_params(key, state_dim, action_dim):
    """Matches PyTorch init: xavier_uniform_(gain=calculate_gain('relu')) for
    weights, bias = 0.01.  Weights stored as (in, out) so kernel does x @ W."""
    gain = jnp.sqrt(2.0)

    def xavier(k, fan_in, fan_out):
        bound = gain * jnp.sqrt(6.0 / (fan_in + fan_out))
        return jax.random.uniform(
            k, (fan_in, fan_out), dtype=jnp.float32, minval=-bound, maxval=bound
        )

    k1, k2, k3 = jax.random.split(key, 3)
    w1 = xavier(k1, state_dim, HIDDEN_DIMS)
    b1 = jnp.full((1, HIDDEN_DIMS), 0.01, dtype=jnp.float32)
    w2 = xavier(k2, HIDDEN_DIMS, HIDDEN_DIMS)
    b2 = jnp.full((1, HIDDEN_DIMS), 0.01, dtype=jnp.float32)
    w3 = xavier(k3, HIDDEN_DIMS, action_dim)
    b3 = jnp.full((1, action_dim), 0.01, dtype=jnp.float32)
    return (w1, b1, w2, b2, w3, b3)


def _reference_bf16(states, params, max_action=1.0):
    """Pure-JAX reference with identical bf16-input / f32-accumulation math."""
    w1, b1, w2, b2, w3, b3 = params
    x = states.astype(jnp.bfloat16)
    w1b, w2b, w3b = (w.astype(jnp.bfloat16) for w in (w1, w2, w3))
    h1 = jnp.maximum(jnp.dot(x, w1b, preferred_element_type=jnp.float32) + b1, 0.0)
    h1 = h1.astype(jnp.bfloat16)
    h2 = jnp.maximum(jnp.dot(h1, w2b, preferred_element_type=jnp.float32) + b2, 0.0)
    h2 = h2.astype(jnp.bfloat16)
    a = jnp.tanh(jnp.dot(h2, w3b, preferred_element_type=jnp.float32) + b3)
    return a * (0.5 * max_action) + 0.5


def _reference_f32(states, params, max_action=1.0):
    """Full-f32 reference (exact PyTorch semantics)."""
    w1, b1, w2, b2, w3, b3 = params
    h1 = jnp.maximum(states @ w1 + b1, 0.0)
    h2 = jnp.maximum(h1 @ w2 + b2, 0.0)
    a = jnp.tanh(h2 @ w3 + b3)
    return (a * max_action + 1.0) / 2.0


if __name__ == "__main__":
    key = jax.random.PRNGKey(0)
    k_x1, k_x2, k_p = jax.random.split(key, 3)

    state_dim = 12
    action_dim = 4
    max_action = 1.0
    params = init_params(k_p, state_dim, action_dim)

    # --- case 1: tiny ragged batch (single-tile path, no padding needed) ---
    B1 = 10  # deliberately not a multiple of 8
    states1 = jax.random.normal(k_x1, (B1, state_dim), jnp.float32)
    out1 = jax.block_until_ready(local_actor_forward(states1, params,
                                                     max_action=max_action))
    assert out1.shape == (B1, action_dim)
    assert jnp.allclose(out1, _reference_bf16(states1, params, max_action),
                        atol=1e-3, rtol=1e-3)
    assert jnp.allclose(out1, _reference_f32(states1, params, max_action),
                        atol=5e-2, rtol=5e-2)
    # [0, 1] bound holds because max_action == 1 here.
    assert bool(jnp.all((out1 >= 0.0) & (out1 <= 1.0)))

    # --- case 2: larger ragged batch (multi-step grid + partial tail block) --
    B2 = 2600  # > single_tile_max, not a multiple of the tile -> masked tail
    states2 = jax.random.normal(k_x2, (B2, state_dim), jnp.float32)
    out2 = jax.block_until_ready(local_actor_forward(states2, params,
                                                     max_action=max_action))
    assert out2.shape == (B2, action_dim)
    assert jnp.allclose(out2, _reference_bf16(states2, params, max_action),
                        atol=1e-3, rtol=1e-3)
    assert jnp.allclose(out2, _reference_f32(states2, params, max_action),
                        atol=5e-2, rtol=5e-2)
    assert bool(jnp.all((out2 >= 0.0) & (out2 <= 1.0)))

    print("KERNEL_OK")
</pallas_src>

<mosaic_0001>
module attributes {stable_mosaic.version = 11 : i64} {
  func.func @_actor_kernel(%arg0: i32, %arg1: memref<10x12xf32, #tpu.memory_space<vmem>>, %arg2: memref<12x128xbf16, #tpu.memory_space<vmem>>, %arg3: memref<1x128xf32, #tpu.memory_space<vmem>>, %arg4: memref<128x128xbf16, #tpu.memory_space<vmem>>, %arg5: memref<1x128xf32, #tpu.memory_space<vmem>>, %arg6: memref<128x4xbf16, #tpu.memory_space<vmem>>, %arg7: memref<1x4xf32, #tpu.memory_space<vmem>>, %arg8: memref<10x4xf32, #tpu.memory_space<vmem>>) attributes {dimension_semantics = [#tpu.dimension_semantics<parallel>], iteration_bounds = array<i64: 1>, scalar_prefetch = 0 : i64, scratch_operands = 0 : i64, tpu.core_type = #tpu.core_type<tc>, window_params = [{transform_indices = @transform_0, window_bounds = array<i64: 10, 12>}, {pipeline_mode = #tpu.pipeline_mode<synchronous>, transform_indices = @transform_1, window_bounds = array<i64: 12, 128>}, {pipeline_mode = #tpu.pipeline_mode<synchronous>, transform_indices = @transform_2, window_bounds = array<i64: 1, 128>}, {pipeline_mode = #tpu.pipeline_mode<synchronous>, transform_indices = @transform_3, window_bounds = array<i64: 128, 128>}, {pipeline_mode = #tpu.pipeline_mode<synchronous>, transform_indices = @transform_4, window_bounds = array<i64: 1, 128>}, {pipeline_mode = #tpu.pipeline_mode<synchronous>, transform_indices = @transform_5, window_bounds = array<i64: 128, 4>}, {pipeline_mode = #tpu.pipeline_mode<synchronous>, transform_indices = @transform_6, window_bounds = array<i64: 1, 4>}, {transform_indices = @transform_7, window_bounds = array<i64: 10, 4>}]} {
    %c0 = arith.constant 0 : index
    %c0_0 = arith.constant 0 : index
    %0 = vector.load %arg1[%c0, %c0_0] : memref<10x12xf32, #tpu.memory_space<vmem>>, vector<10x12xf32>
    %1 = arith.truncf %0 : vector<10x12xf32> to vector<10x12xbf16>
    %c0_1 = arith.constant 0 : index
    %c0_2 = arith.constant 0 : index
    %2 = vector.load %arg2[%c0_1, %c0_2] : memref<12x128xbf16, #tpu.memory_space<vmem>>, vector<12x128xbf16>
    %cst = arith.constant dense<0.000000e+00> : vector<10x128xf32>
    %3 = tpu.matmul %1, %2, %cst {dimension_numbers = #tpu.dot_dimension_numbers<[1], [0], [0], [1], [0, 0, 1, 1], [], []>} : vector<10x12xbf16>, vector<12x128xbf16>, vector<10x128xf32> -> vector<10x128xf32>
    %c0_3 = arith.constant 0 : index
    %c0_4 = arith.constant 0 : index
    %4 = vector.load %arg3[%c0_3, %c0_4] : memref<1x128xf32, #tpu.memory_space<vmem>>, vector<1x128xf32>
    %5 = vector.broadcast %4 : vector<1x128xf32> to vector<10x128xf32>
    %6 = arith.addf %3, %5 : vector<10x128xf32>
    %cst_5 = arith.constant 0.000000e+00 : f32
    %7 = vector.broadcast %cst_5 : f32 to vector<10x128xf32>
    %8 = arith.maximumf %6, %7 : vector<10x128xf32>
    %9 = arith.truncf %8 : vector<10x128xf32> to vector<10x128xbf16>
    %c0_6 = arith.constant 0 : index
    %c0_7 = arith.constant 0 : index
    %10 = vector.load %arg4[%c0_6, %c0_7] : memref<128x128xbf16, #tpu.memory_space<vmem>>, vector<128x128xbf16>
    %cst_8 = arith.constant dense<0.000000e+00> : vector<10x128xf32>
    %11 = tpu.matmul %9, %10, %cst_8 {dimension_numbers = #tpu.dot_dimension_numbers<[1], [0], [0], [1], [0, 0, 1, 1], [], []>} : vector<10x128xbf16>, vector<128x128xbf16>, vector<10x128xf32> -> vector<10x128xf32>
    %c0_9 = arith.constant 0 : index
    %c0_10 = arith.constant 0 : index
    %12 = vector.load %arg5[%c0_9, %c0_10] : memref<1x128xf32, #tpu.memory_space<vmem>>, vector<1x128xf32>
    %13 = vector.broadcast %12 : vector<1x128xf32> to vector<10x128xf32>
    %14 = arith.addf %11, %13 : vector<10x128xf32>
    %cst_11 = arith.constant 0.000000e+00 : f32
    %15 = vector.broadcast %cst_11 : f32 to vector<10x128xf32>
    %16 = arith.maximumf %14, %15 : vector<10x128xf32>
    %17 = arith.truncf %16 : vector<10x128xf32> to vector<10x128xbf16>
    %c0_12 = arith.constant 0 : index
    %c0_13 = arith.constant 0 : index
    %18 = vector.load %arg6[%c0_12, %c0_13] : memref<128x4xbf16, #tpu.memory_space<vmem>>, vector<128x4xbf16>
    %cst_14 = arith.constant dense<0.000000e+00> : vector<10x4xf32>
    %19 = tpu.matmul %17, %18, %cst_14 {dimension_numbers = #tpu.dot_dimension_numbers<[1], [0], [0], [1], [0, 0, 1, 1], [], []>} : vector<10x128xbf16>, vector<128x4xbf16>, vector<10x4xf32> -> vector<10x4xf32>
    %c0_15 = arith.constant 0 : index
    %c0_16 = arith.constant 0 : index
    %20 = vector.load %arg7[%c0_15, %c0_16] : memref<1x4xf32, #tpu.memory_space<vmem>>, vector<1x4xf32>
    %21 = vector.broadcast %20 : vector<1x4xf32> to vector<10x4xf32>
    %22 = arith.addf %19, %21 : vector<10x4xf32>
    %23 = math.tanh %22 : vector<10x4xf32>
    %cst_17 = arith.constant 5.000000e-01 : f32
    %24 = vector.broadcast %cst_17 : f32 to vector<10x4xf32>
    %25 = arith.mulf %23, %24 : vector<10x4xf32>
    %cst_18 = arith.constant 5.000000e-01 : f32
    %26 = vector.broadcast %cst_18 : f32 to vector<10x4xf32>
    %27 = arith.addf %25, %26 : vector<10x4xf32>
    %c0_19 = arith.constant 0 : index
    %c0_20 = arith.constant 0 : index
    %28 = vector.load %arg8[%c0_19, %c0_20] : memref<10x4xf32, #tpu.memory_space<vmem>>, vector<10x4xf32>
    tpu.vector_store %arg8[%c0_19, %c0_20], %27 {strides = array<i32>} : memref<10x4xf32, #tpu.memory_space<vmem>>, vector<10x4xf32>,
    return
  }
  func.func @transform_0(%arg0: i32) -> (i32, i32) {
    %c0_i32 = arith.constant 0 : i32
    %c0_i32_0 = arith.constant 0 : i32
    return %arg0, %c0_i32 : i32, i32
  }
  func.func @transform_1(%arg0: i32) -> (i32, i32) {
    %c0_i32 = arith.constant 0 : i32
    %c0_i32_0 = arith.constant 0 : i32
    %c0_i32_1 = arith.constant 0 : i32
    return %c0_i32, %c0_i32_0 : i32, i32
  }
  func.func @transform_2(%arg0: i32) -> (i32, i32) {
    %c0_i32 = arith.constant 0 : i32
    %c0_i32_0 = arith.constant 0 : i32
    %c0_i32_1 = arith.constant 0 : i32
    return %c0_i32, %c0_i32_0 : i32, i32
  }
  func.func @transform_3(%arg0: i32) -> (i32, i32) {
    %c0_i32 = arith.constant 0 : i32
    %c0_i32_0 = arith.constant 0 : i32
    %c0_i32_1 = arith.constant 0 : i32
    return %c0_i32, %c0_i32_0 : i32, i32
  }
  func.func @transform_4(%arg0: i32) -> (i32, i32) {
    %c0_i32 = arith.constant 0 : i32
    %c0_i32_0 = arith.constant 0 : i32
    %c0_i32_1 = arith.constant 0 : i32
    return %c0_i32, %c0_i32_0 : i32, i32
  }
  func.func @transform_5(%arg0: i32) -> (i32, i32) {
    %c0_i32 = arith.constant 0 : i32
    %c0_i32_0 = arith.constant 0 : i32
    %c0_i32_1 = arith.constant 0 : i32
    return %c0_i32, %c0_i32_0 : i32, i32
  }
  func.func @transform_6(%arg0: i32) -> (i32, i32) {
    %c0_i32 = arith.constant 0 : i32
    %c0_i32_0 = arith.constant 0 : i32
    %c0_i32_1 = arith.constant 0 : i32
    return %c0_i32, %c0_i32_0 : i32, i32
  }
  func.func @transform_7(%arg0: i32) -> (i32, i32) {
    %c0_i32 = arith.constant 0 : i32
    %c0_i32_0 = arith.constant 0 : i32
    return %arg0, %c0_i32 : i32, i32
  }
}

</mosaic_0001>

<bundles_post_ra>
// kernel: tpu_custom_call.1
= control target key start
LH: loop header
LB: loop body
LE: loop exit
PB: predicated region body
PF: predicated region fallthrough
CT: control target
= control target key end

     0   :  { %12 = vsyncpa [#allocation3], 0  ;;  %s489_s24 = smov [#allocation2]   ;;  %s635_s0 = inlined_call_operand.hbm [shape: f32[10,12], index: 0, kind: input, shape index: {}]   ;;  %s636_s1 = inlined_call_operand.vmem [shape: bf16[12,128], index: 1, kind: input, shape index: {}]   ;;  %s637_s2 = inlined_call_operand.vmem [shape: f32[1,128], index: 2, kind: input, shape index: {}]   ;;  %s638_s3 = inlined_call_operand.vmem [shape: bf16[128,128], index: 3, kind: input, shape index: {}]   ;;  %s639_s4 = inlined_call_operand.vmem [shape: f32[1,128], index: 4, kind: input, shape index: {}]   ;;  %s640_s5 = inlined_call_operand.vmem [shape: bf16[128,4], index: 5, kind: input, shape index: {}]   ;;  %s641_s6 = inlined_call_operand.vmem [shape: f32[1,4], index: 6, kind: input, shape index: {}]   ;;  %s642_s7 = inlined_call_operand.vmem [shape: f32[10,4], index: 7, kind: output, shape index: {}]  }
   0x1   :  { %s18_s25 = sshll.u32 %s489_s24, 4  ;;  %s465_s28 = scalar_lea.hbm %s635_s0, 256  ;;  %s19_s25 = int_to_ptr.vmem [resolvable:$true] %s18_s25 }
   0x2   :  { %p466_p0 = scmp.ne.s32.totalorder %s635_s0, %s465_s28  ;;  %p469_p1 = scmp.lt.u32.totalorder %s465_s28, %s635_s0 }
   0x4   :  { %p471_p2 = pnand %p469_p1, %p466_p0 }
   0x6   :  { %474 = shalt.err (!%p471_p2)
}
   0x7   :  { %s475_s10 = scalar_lea.vmem %s19_s25, 256  ;;  %p480_p4 = scmp.lt.s32.totalorder %s19_s25, %s19_s25 }
   0x8   :  { %p476_p3 = scmp.ne.s32.totalorder %s19_s25, %s475_s10  ;;  %p481_p5 = scmp.lt.s32.totalorder %s475_s10, %s475_s10 }
   0xa   :  { %p482_p6 = por %p481_p5, %p480_p4 }
   0xc   :  { %p483_p7 = pnand %p482_p6, %p476_p3 }
   0xe   :  { %486 = shalt.err (!%p483_p7)
}
   0xf   :  { %s490_s11 = smov 128   ;;  %s491_s12 = smov 8  }
  0x10   :  { %24 = dma.hbm_to_vmem [thread:$0]  %s635_s0, 256, %s19_s25, [#allocation3], %s490_s11, %s490_s11, %s491_s12  }
  0x11   :  { %487 = dma.done.wait [#allocation3], 256  }
  0x12   :  { %488 = vsyncadd [#allocation3], 4294967040  ;;  %v492_v0 = vmov 0.0   ;;  %vm493_vm0 = vmmov 0   ;;  %vm62_vm1 = vcmask 1045504   ;;  %v41_v2 = vld [vmem:[#allocation2] sm:$0xff] }
  0x13   :  { %393 = vmatprep.subr.bf16.mxu0 %v492_v0  ;;  %395 = vmatprep.mubr.msk.bf16.mxu0 %vm493_vm0, %v492_v0  ;;  %v444_v1 = vld [vmem:[%s636_s1] sm:$0x3f]   ;;  %v42_v3 = vld [vmem:[#allocation2 + $0x8] sm:$0x3]  ;;  %vm58_vm2 = vcmask 97280   ;;  %v447_v8 = vld [vmem:[%s638_s3 + $0x10] sm:$0xff]  }
  0x14   :  { %399 = vmatprep.subr.bf16.mxu1 %v492_v0  ;;  %415 = vmatprep.mubr.msk.bf16.mxu1 %vm493_vm0, %v492_v0  ;;  %v64_v4 = vsel %vm62_vm1, %v444_v1, 0  ;;  %v43_v5 = vpack.c.bf16 %v42_v3, %v41_v2  ;;  %v445_v6 = vld [vmem:[%s638_s3] sm:$0xff]   ;;  %v446_v7 = vld [vmem:[%s638_s3 + $0x8] sm:$0xff]   ;;  %v448_v9 = vld [vmem:[%s638_s3 + $0x18] sm:$0xff]   ;;  %vm343_vm3 = vcmask 31744   ;;  %vm345_vm4 = vcmask 25600  }
  0x15   :  { %394 = vmatpush3.bf16.msra.mxu0 %v64_v4  ;;  %400 = vmatpush3.bf16.msra.mxu1 %v445_v6  ;;  %v449_v10 = vld [vmem:[%s638_s3 + $0x20] sm:$0xff]   ;;  %v450_v11 = vld [vmem:[%s638_s3 + $0x28] sm:$0xff]   ;;  %v451_v12 = vld [vmem:[%s638_s3 + $0x30] sm:$0xff]  }
  0x16   :  { %419 = vmatprep.subr.bf16.mxu0 %v492_v0  ;;  %401 = vmatprep.subr.bf16.mxu1 %v492_v0  ;;  %v452_v13 = vld [vmem:[%s638_s3 + $0x38] sm:$0xff]   ;;  %v453_v14 = vld [vmem:[%s640_s5] sm:$0xff]   ;;  %v454_v15 = vld [vmem:[%s640_s5 + $0x8] sm:$0xff]  }
  0x17   :  { %v455_v16 = vld [vmem:[%s640_s5 + $0x10] sm:$0xff]   ;;  %v456_v17 = vld [vmem:[%s640_s5 + $0x18] sm:$0xff]   ;;  %v457_v18 = vld [vmem:[%s640_s5 + $0x20] sm:$0xff]  }
  0x18   :  { %396 = vmatmul.mubr.msk.bf16.vlgmr.msra.gmra.mrb[0].mxu0 %vm58_vm2, %v43_v5  ;;  %v458_v19 = vld [vmem:[%s640_s5 + $0x28] sm:$0xff]   ;;  %v352_v20 = vld [vmem:[%s637_s2] ss:$0 sm:$0xff]  ;;  %v459_v30 = vld [vmem:[%s640_s5 + $0x30] sm:$0xff]  }
  0x19   :  { %435 = vmatprep.mubr.msk.bf16.mxu0 %vm493_vm0, %v492_v0  ;;  %402 = vmatpush3.bf16.msra.mxu1 %v446_v7  ;;  %v460_v31 = vld [vmem:[%s640_s5 + $0x38] sm:$0xff]   ;;  %v355_v32 = vld [vmem:[%s639_s4] ss:$0 sm:$0xff] }
  0x1a   :  { %403 = vmatprep.subr.bf16.mxu1 %v492_v0  ;;  %420 = vmatpush3.bf16.msra.mxu0 %v453_v14  ;;  %v364_v42 = vld [vmem:[%s641_s6] ss:$0 sm:$0xff] }
  0x1b   :  { %421 = vmatprep.subr.bf16.mxu0 %v492_v0 }
  0x1d   :  { %404 = vmatpush3.bf16.msra.mxu1 %v447_v8 }
  0x1e   :  { %405 = vmatprep.subr.bf16.mxu1 %v492_v0  ;;  %422 = vmatpush3.bf16.msra.mxu0 %v454_v15 }
  0x1f   :  { %423 = vmatprep.subr.bf16.mxu0 %v492_v0 }
  0x21   :  { %406 = vmatpush3.bf16.msra.mxu1 %v448_v9 }
  0x22   :  { %407 = vmatprep.subr.bf16.mxu1 %v492_v0  ;;  %424 = vmatpush3.bf16.msra.mxu0 %v455_v16 }
  0x23   :  { %425 = vmatprep.subr.bf16.mxu0 %v492_v0 }
  0x25   :  { %408 = vmatpush3.bf16.msra.mxu1 %v449_v10 }
  0x26   :  { %409 = vmatprep.subr.bf16.mxu1 %v492_v0  ;;  %426 = vmatpush3.bf16.msra.mxu0 %v456_v17 }
  0x27   :  { %427 = vmatprep.subr.bf16.mxu0 %v492_v0 }
  0x29   :  { %410 = vmatpush3.bf16.msra.mxu1 %v450_v11 }
  0x2a   :  { %411 = vmatprep.subr.bf16.mxu1 %v492_v0  ;;  %428 = vmatpush3.bf16.msra.mxu0 %v457_v18 }
  0x2b   :  { %429 = vmatprep.subr.bf16.mxu0 %v492_v0 }
  0x2d   :  { %412 = vmatpush3.bf16.msra.mxu1 %v451_v12 }
  0x2e   :  { %413 = vmatprep.subr.bf16.mxu1 %v492_v0  ;;  %430 = vmatpush3.bf16.msra.mxu0 %v458_v19 }
  0x2f   :  { %431 = vmatprep.subr.bf16.mxu0 %v492_v0 }
  0x31   :  { %414 = vmatpush3.bf16.msra.mxu1 %v452_v13 }
  0x32   :  { %432 = vmatpush3.bf16.msra.mxu0 %v459_v30 }
  0x33   :  { %433 = vmatprep.subr.bf16.mxu0 %v492_v0 }
  0x36   :  { %434 = vmatpush3.bf16.msra.mxu0 %v460_v31 }
  0xeb   :  { %v100_v21 = vpop.f32.mrb[0].mxu0 }
  0xec   :  { %v101_v22 = vadd.f32 %v352_v20, %v100_v21  ;;  %v397_v23 = vpop.f32.mrb[1].mxu0 }
  0xed   :  { %v103_v24 = vpop.f32.mrb[2].mxu0 }
  0xee   :  { %v104_v25 = vadd.f32 %v352_v20, %v103_v24  ;;  %v398_v26 = vpop.f32.mrb[3].mxu0  ;;  %v107_v27 = vmax.f32 %v101_v22, 0.0 }
  0xf0   :  { %v108_v28 = vmax.f32 %v104_v25, 0.0 }
  0xf2   :  { %v109_v29 = vpack.c.bf16 %v108_v28, %v107_v27 }
  0xf4   :  { %416 = vmatmul.mubr.bf16.vlgmr.msra.gmra.mrb[0].mxu1 %v109_v29 }
 0x1c7   :  { %v215_v33 = vpop.f32.mrb[0].mxu1 }
 0x1c8   :  { %v216_v34 = vadd.f32 %v355_v32, %v215_v33  ;;  %v417_v35 = vpop.f32.mrb[1].mxu1 }
 0x1c9   :  { %v218_v36 = vpop.f32.mrb[2].mxu1 }
 0x1ca   :  { %v219_v37 = vadd.f32 %v355_v32, %v218_v36  ;;  %v418_v38 = vpop.f32.mrb[3].mxu1  ;;  %v222_v39 = vmax.f32 %v216_v34, 0.0 }
 0x1cc   :  { %v223_v40 = vmax.f32 %v219_v37, 0.0 }
 0x1ce   :  { %v224_v41 = vpack.c.bf16 %v223_v40, %v222_v39 }
 0x1d0   :  { %436 = vmatmul.mubr.bf16.vlgmr.msra.gmra.mrb[4].mxu0 %v224_v41 }
 0x2a3   :  { %v330_v43 = vpop.f32.mrb[4].mxu0 }
 0x2a4   :  { %v331_v44 = vadd.f32 %v364_v42, %v330_v43  ;;  %v437_v45 = vpop.f32.mrb[5].mxu0 }
 0x2a5   :  { %v333_v46 = vpop.f32.mrb[6].mxu0 }
 0x2a6   :  { %461 = vtanh.f32 %v331_v44  ;;  %v334_v47 = vadd.f32 %v364_v42, %v333_v46  ;;  %v438_v48 = vpop.f32.mrb[7].mxu0 }
 0x2a8   :  { %463 = vtanh.f32 %v334_v47 }
 0x2b0   :  { %v462_v49 = vpop.eup %461 }
 0x2b1   :  { %v339_v50 = vmul.f32 0.5, %v462_v49 }
 0x2b2   :  { %v464_v51 = vpop.eup %463 }
 0x2b3   :  { %v341_v52 = vadd.f32 0.5, %v339_v50  ;;  %v340_v53 = vmul.f32 0.5, %v464_v51 }
 0x2b5   :  { %344 = vst.msk [vmem:[%s642_s7] sm:$0xff] %vm343_vm3, %v341_v52  ;;  %v342_v54 = vadd.f32 0.5, %v340_v53 }
 0x2b7   :  { %346 = vst.msk [vmem:[%s642_s7 + $0x8] sm:$0x3] %vm345_vm4, %v342_v54 }
 0x2b8   :  { %351 = vsyncpa [#allocation3], 1 }

</bundles_post_ra>
